<compile_context>
chip_gen: v7x
topology: tpu7x:2x2x1
jax: 0.10.0
libtpu: 0.0.40
codegen_flags: <defaults>
</compile_context>

<pallas_src>
import functools

import jax
import jax.numpy as jnp
import numpy as np
from jax.experimental import pallas as pl
from jax.experimental.pallas import tpu as pltpu


def _coord_attention_kernel(x_ref, ph_ref, pw_ref, eh_ref, ew_ref,
                            w1_ref, b1_ref, w2_ref, b2_ref, w3_ref, b3_ref,
                            out_ref, *, channels, inv_w, inv_h, mat_dtype):
    rows = x_ref.shape[0]            # rows = nb * C (b-major)
    nb = rows // channels

    xs = x_ref[...]                  # (R, HW), kept in the input dtype
    xs_mm = xs.astype(mat_dtype)     # MXU feed dtype (bf16 or f32)

    # Both adaptive average pools fused into lane-dense matmuls against 0/1
    # pooling matrices; exact f32 1/W, 1/H scales applied on the tiny results.
    xch = jnp.dot(xs_mm, ph_ref[...], preferred_element_type=jnp.float32) * inv_w  # (R, H)
    xcw = jnp.dot(xs_mm, pw_ref[...], preferred_element_type=jnp.float32) * inv_h  # (R, W)

    H = xch.shape[-1]
    W = xcw.shape[-1]

    # Tiny per-batch channel-mixing stage as batched dot_generals (no unrolled
    # per-batch loop; batch dim present on both operands -> no transposes).
    xch3 = xch.reshape(nb, channels, H)
    xcw3 = xcw.reshape(nb, channels, W)

    w1 = jnp.broadcast_to(w1_ref[...], (nb,) + w1_ref.shape)    # (nb, T, C)
    w2 = jnp.broadcast_to(w2_ref[...], (nb,) + w2_ref.shape)    # (nb, C, T)
    w3 = jnp.broadcast_to(w3_ref[...], (nb,) + w3_ref.shape)    # (nb, C, T)
    b1 = b1_ref[...][None]                                      # (1, T, 1)
    b2 = b2_ref[...][None]                                      # (1, C, 1)
    b3 = b3_ref[...][None]                                      # (1, C, 1)

    def hswish(v):
        return v * (jnp.clip(v + 3.0, 0.0, 6.0) * (1.0 / 6.0))

    # conv1 (+ folded BN) + h_swish; H-part and W-part stay separate (exact,
    # since 1x1 conv / eval-BN / h_swish are position-wise).
    yh = hswish(jnp.einsum('ntc,nch->nth', w1, xch3,
                           preferred_element_type=jnp.float32) + b1)      # (nb, T, H)
    yw = hswish(jnp.einsum('ntc,ncw->ntw', w1, xcw3,
                           preferred_element_type=jnp.float32) + b1)      # (nb, T, W)

    # conv2 / conv3 + sigmoid -> per-row / per-column gates.
    gh = jax.nn.sigmoid(jnp.einsum('nct,nth->nch', w2, yh,
                                   preferred_element_type=jnp.float32) + b2)  # (nb, C, H)
    gw = jax.nn.sigmoid(jnp.einsum('nct,ntw->ncw', w3, yw,
                                   preferred_element_type=jnp.float32) + b3)  # (nb, C, W)

    gh2 = gh.reshape(rows, H).astype(mat_dtype)    # (R, H)
    gw2 = gw.reshape(rows, W).astype(mat_dtype)    # (R, W)

    # Expand gates back to the lane-dense (R, HW) layout on the MXU:
    #   gate[r, h*W + w] = gh2[r, h] * gw2[r, w]
    gate = (jnp.dot(gh2, eh_ref[...], preferred_element_type=jnp.float32) *
            jnp.dot(gw2, ew_ref[...], preferred_element_type=jnp.float32))     # (R, HW) f32

    # Final gated residual: input-dtype x times f32 gate, single cast at store.
    out_ref[...] = (xs * gate).astype(out_ref.dtype)


def _pick_block_batch(n, c, bytes_per_batch, tile_cap_bytes, min_steps=4):
    """Batch elements per grid step.

    Preferences: row block (nb*C) a multiple of 8 sublanes (or the full array);
    per-step activation tile under tile_cap_bytes; >= min_steps grid steps when
    divisors allow (>= 2 per v7x TensorCore so prefetch/writeback overlap).
    """
    valid = [d for d in range(1, n + 1)
             if n % d == 0 and ((d * c) % 8 == 0 or d == n)]
    fitting = [d for d in valid if d * bytes_per_batch <= tile_cap_bytes]
    if not fitting:
        return min(valid)
    preferred = [d for d in fitting if n // d >= min_steps]
    if preferred:
        return max(preferred)
    return min(fitting)            # can't reach min_steps: maximize step count


def _vmem_budget(const_bytes):
    try:
        phys = int(pltpu.get_tpu_info().vmem_capacity_bytes)
    except Exception:
        phys = 64 << 20            # conservative (v7x-sized) fallback
    # ~48 MiB scoped on 64 MiB parts, ~96 MiB on 128 MiB parts (v5e/v6e),
    # leaving headroom for Mosaic internal scratch.
    scoped = min((phys * 3) // 4, 100 << 20)
    headroom = 4 << 20
    # In/out tiles double-buffered (4x tile); grid-invariant constants counted
    # twice (conservative).
    # TODO(synk): single-buffer grid-invariant operands via pipeline_mode=pl.Buffered(1)
    # once verified on the target jax version.
    tile_cap = (scoped - 2 * const_bytes - headroom) // 4
    tile_cap = max(tile_cap, 1 << 20)
    tile_cap = min(tile_cap, (24 << 20) if phys >= (96 << 20) else (8 << 20))
    return scoped, tile_cap, headroom


def coord_attention(x, w1, b1, bn_scale, bn_offset, w2, b2, w3, b3,
                    *, block_batch=None, mxu_bf16=None):
    """x: (N, C, H, W); 1x1 conv weights as 2-D channel matrices."""
    N, C, H, W = x.shape
    T = w1.shape[0]
    OC = w2.shape[0]
    assert OC == C, "broadcast in `short * out_w * out_h` requires OC == C"
    HW = H * W

    f32 = jnp.float32
    if mxu_bf16 is None:
        mxu_bf16 = (x.dtype == jnp.bfloat16)
    mat_dtype = jnp.bfloat16 if mxu_bf16 else jnp.float32

    # Fold eval-mode BatchNorm into conv1.
    w1f = (bn_scale[:, None] * w1).astype(f32)                    # (T, C)
    b1f = (bn_scale * b1 + bn_offset).astype(f32).reshape(T, 1)   # (T, 1)
    w2f = w2.astype(f32)
    b2f = b2.astype(f32).reshape(OC, 1)
    w3f = w3.astype(f32)
    b3f = b3.astype(f32).reshape(OC, 1)

    # 0/1 pooling and gate-expansion matrices (exact in bf16).
    idx = np.arange(HW)
    Ph = np.zeros((HW, H), np.float32)
    Ph[idx, idx // W] = 1.0
    Pw = np.zeros((HW, W), np.float32)
    Pw[idx, idx % W] = 1.0
    ph = jnp.asarray(Ph, dtype=mat_dtype)          # (HW, H)  sum over W
    pw = jnp.asarray(Pw, dtype=mat_dtype)          # (HW, W)  sum over H
    eh = jnp.asarray(Ph.T, dtype=mat_dtype)        # (H, HW)  row-gate expansion
    ew = jnp.asarray(Pw.T, dtype=mat_dtype)        # (W, HW)  col-gate expansion

    consts = (ph, pw, eh, ew, w1f, b1f, w2f, b2f, w3f, b3f)
    const_bytes = sum(int(a.size) * a.dtype.itemsize for a in consts)
    bytes_per_batch = C * HW * x.dtype.itemsize

    scoped, tile_cap, headroom = _vmem_budget(const_bytes)
    nb = block_batch if block_batch is not None else _pick_block_batch(
        N, C, bytes_per_batch, tile_cap)
    assert N % nb == 0, "block_batch must divide the batch size"
    RB = nb * C
    grid = (N // nb,)
    vmem_limit = int(min(scoped,
                         max(32 << 20,
                             4 * nb * bytes_per_batch + 2 * const_bytes + headroom)))

    x_rows = x.reshape(N * C, HW)      # free view of contiguous NCHW, rows b-major

    full = lambda shape: pl.BlockSpec(shape, lambda i: (0,) * len(shape))

    out_rows = pl.pallas_call(
        functools.partial(_coord_attention_kernel, channels=C,
                          inv_w=float(1.0 / W), inv_h=float(1.0 / H),
                          mat_dtype=mat_dtype),
        out_shape=jax.ShapeDtypeStruct((N * C, HW), x.dtype),
        grid_spec=pltpu.PrefetchScalarGridSpec(
            num_scalar_prefetch=0,
            grid=grid,
            in_specs=[
                pl.BlockSpec((RB, HW), lambda i: (i, 0)),   # x, lane-dense row slab
                full((HW, H)),    # pool over W (0/1)
                full((HW, W)),    # pool over H (0/1)
                full((H, HW)),    # row-gate expansion (0/1)
                full((W, HW)),    # col-gate expansion (0/1)
                full((T, C)),     # conv1 weight (BN folded)
                full((T, 1)),     # conv1 bias   (BN folded)
                full((OC, T)),    # conv2 weight
                full((OC, 1)),    # conv2 bias
                full((OC, T)),    # conv3 weight
                full((OC, 1)),    # conv3 bias
            ],
            out_specs=pl.BlockSpec((RB, HW), lambda i: (i, 0)),
        ),
        compiler_params=pltpu.CompilerParams(
            dimension_semantics=("parallel",),
            vmem_limit_bytes=vmem_limit),
    )(x_rows, *consts)

    return out_rows.reshape(N, C, H, W)


def coord_attention_ref(x, w1, b1, bn_scale, bn_offset, w2, b2, w3, b3):
    """Pure-JAX reference mirroring the PyTorch forward (with cat/split)."""
    N, C, H, W = x.shape
    x_h = x.mean(axis=3)                                    # (N, C, H)
    x_w = x.mean(axis=2)                                    # (N, C, W)
    cat = jnp.concatenate([x_h, x_w], axis=2)               # (N, C, H+W)
    y = jnp.einsum('tc,ncl->ntl', w1, cat) + b1[None, :, None]
    y = y * bn_scale[None, :, None] + bn_offset[None, :, None]
    y = y * jnp.clip(y + 3.0, 0.0, 6.0) / 6.0               # h_swish
    y_h, y_w = y[:, :, :H], y[:, :, H:]
    out_h = jax.nn.sigmoid(jnp.einsum('ot,ntl->nol', w2, y_h) + b2[None, :, None])
    out_w = jax.nn.sigmoid(jnp.einsum('ot,ntl->nol', w3, y_w) + b3[None, :, None])
    return x * out_w[:, :, None, :] * out_h[:, :, :, None]


if __name__ == "__main__":
    # Shapes consistent with the module: in_channels = out_channels = 4,
    # reduction=32 -> temp_c = max(8, 4 // 32) = 8.
    N, C, H, W = 2, 4, 16, 16
    T = max(8, C // 32)
    OC = C

    key = jax.random.PRNGKey(0)
    kx, k1, k1b, k2, k2b, k3, k3b = jax.random.split(key, 7)

    x = jax.random.normal(kx, (N, C, H, W), dtype=jnp.float32)

    # 1x1 conv weights (squeezed from (out, in, 1, 1)) and biases.
    w1 = jax.random.normal(k1, (T, C), dtype=jnp.float32) * 0.2
    b1 = jax.random.normal(k1b, (T,), dtype=jnp.float32) * 0.1
    w2 = jax.random.normal(k2, (OC, T), dtype=jnp.float32) * 0.2
    b2 = jax.random.normal(k2b, (OC,), dtype=jnp.float32) * 0.1
    w3 = jax.random.normal(k3, (OC, T), dtype=jnp.float32) * 0.2
    b3 = jax.random.normal(k3b, (OC,), dtype=jnp.float32) * 0.1

    # BatchNorm2d default-initialized, eval mode, folded to scale/offset.
    eps = 1e-5
    gamma = jnp.ones((T,), jnp.float32)
    beta = jnp.zeros((T,), jnp.float32)
    run_mean = jnp.zeros((T,), jnp.float32)
    run_var = jnp.ones((T,), jnp.float32)
    bn_scale = gamma / jnp.sqrt(run_var + eps)
    bn_offset = beta - run_mean * bn_scale

    ref = coord_attention_ref(x, w1, b1, bn_scale, bn_offset, w2, b2, w3, b3)

    # Exact path: f32 activations with f32 MXU feeds.
    out = coord_attention(x, w1, b1, bn_scale, bn_offset, w2, b2, w3, b3,
                          mxu_bf16=False)
    out = jax.block_until_ready(out)
    np.testing.assert_allclose(np.asarray(out), np.asarray(ref),
                               rtol=1e-5, atol=1e-5)

    # bf16 activation path: bf16 MXU feeds for the pooling / gate-expansion
    # matmuls, f32 accumulation, exact f32 1/H,1/W scaling, f32 gate at store.
    x_bf = x.astype(jnp.bfloat16)
    out_bf = coord_attention(x_bf, w1, b1, bn_scale, bn_offset, w2, b2, w3, b3)
    out_bf = jax.block_until_ready(out_bf)
    np.testing.assert_allclose(np.asarray(out_bf, dtype=np.float32),
                               np.asarray(ref), rtol=5e-2, atol=5e-2)

    print("KERNEL_OK")
</pallas_src>

<mosaic_0001>
module attributes {stable_mosaic.version = 11 : i64} {
  func.func @_coord_attention_kernel(%arg0: i32, %arg1: memref<8x256xf32, #tpu.memory_space<vmem>>, %arg2: memref<256x16xf32, #tpu.memory_space<vmem>>, %arg3: memref<256x16xf32, #tpu.memory_space<vmem>>, %arg4: memref<16x256xf32, #tpu.memory_space<vmem>>, %arg5: memref<16x256xf32, #tpu.memory_space<vmem>>, %arg6: memref<8x4xf32, #tpu.memory_space<vmem>>, %arg7: memref<8x1xf32, #tpu.memory_space<vmem>>, %arg8: memref<4x8xf32, #tpu.memory_space<vmem>>, %arg9: memref<4x1xf32, #tpu.memory_space<vmem>>, %arg10: memref<4x8xf32, #tpu.memory_space<vmem>>, %arg11: memref<4x1xf32, #tpu.memory_space<vmem>>, %arg12: memref<8x256xf32, #tpu.memory_space<vmem>>) attributes {dimension_semantics = [#tpu.dimension_semantics<parallel>], iteration_bounds = array<i64: 1>, scalar_prefetch = 0 : i64, scratch_operands = 0 : i64, tpu.core_type = #tpu.core_type<tc>, window_params = [{transform_indices = @transform_0, window_bounds = array<i64: 8, 256>}, {pipeline_mode = #tpu.pipeline_mode<synchronous>, transform_indices = @transform_1, window_bounds = array<i64: 256, 16>}, {pipeline_mode = #tpu.pipeline_mode<synchronous>, transform_indices = @transform_2, window_bounds = array<i64: 256, 16>}, {pipeline_mode = #tpu.pipeline_mode<synchronous>, transform_indices = @transform_3, window_bounds = array<i64: 16, 256>}, {pipeline_mode = #tpu.pipeline_mode<synchronous>, transform_indices = @transform_4, window_bounds = array<i64: 16, 256>}, {pipeline_mode = #tpu.pipeline_mode<synchronous>, transform_indices = @transform_5, window_bounds = array<i64: 8, 4>}, {pipeline_mode = #tpu.pipeline_mode<synchronous>, transform_indices = @transform_6, window_bounds = array<i64: 8, 1>}, {pipeline_mode = #tpu.pipeline_mode<synchronous>, transform_indices = @transform_7, window_bounds = array<i64: 4, 8>}, {pipeline_mode = #tpu.pipeline_mode<synchronous>, transform_indices = @transform_8, window_bounds = array<i64: 4, 1>}, {pipeline_mode = #tpu.pipeline_mode<synchronous>, transform_indices = @transform_9, window_bounds = array<i64: 4, 8>}, {pipeline_mode = #tpu.pipeline_mode<synchronous>, transform_indices = @transform_10, window_bounds = array<i64: 4, 1>}, {transform_indices = @transform_11, window_bounds = array<i64: 8, 256>}]} {
    %c0 = arith.constant 0 : index
    %c0_0 = arith.constant 0 : index
    %0 = vector.load %arg1[%c0, %c0_0] : memref<8x256xf32, #tpu.memory_space<vmem>>, vector<8x256xf32>
    %c0_1 = arith.constant 0 : index
    %c0_2 = arith.constant 0 : index
    %1 = vector.load %arg2[%c0_1, %c0_2] : memref<256x16xf32, #tpu.memory_space<vmem>>, vector<256x16xf32>
    %cst = arith.constant dense<0.000000e+00> : vector<8x16xf32>
    %2 = tpu.matmul %0, %1, %cst {dimension_numbers = #tpu.dot_dimension_numbers<[1], [0], [0], [1], [0, 0, 1, 1], [], []>} : vector<8x256xf32>, vector<256x16xf32>, vector<8x16xf32> -> vector<8x16xf32>
    %cst_3 = arith.constant 6.250000e-02 : f32
    %3 = vector.broadcast %cst_3 : f32 to vector<8x16xf32>
    %4 = arith.mulf %2, %3 : vector<8x16xf32>
    %c0_4 = arith.constant 0 : index
    %c0_5 = arith.constant 0 : index
    %5 = vector.load %arg3[%c0_4, %c0_5] : memref<256x16xf32, #tpu.memory_space<vmem>>, vector<256x16xf32>
    %cst_6 = arith.constant dense<0.000000e+00> : vector<8x16xf32>
    %6 = tpu.matmul %0, %5, %cst_6 {dimension_numbers = #tpu.dot_dimension_numbers<[1], [0], [0], [1], [0, 0, 1, 1], [], []>} : vector<8x256xf32>, vector<256x16xf32>, vector<8x16xf32> -> vector<8x16xf32>
    %cst_7 = arith.constant 6.250000e-02 : f32
    %7 = vector.broadcast %cst_7 : f32 to vector<8x16xf32>
    %8 = arith.mulf %6, %7 : vector<8x16xf32>
    %9 = vector.shape_cast %4 : vector<8x16xf32> to vector<2x4x16xf32>
    %10 = vector.shape_cast %8 : vector<8x16xf32> to vector<2x4x16xf32>
    %c0_8 = arith.constant 0 : index
    %c0_9 = arith.constant 0 : index
    %11 = vector.load %arg6[%c0_8, %c0_9] : memref<8x4xf32, #tpu.memory_space<vmem>>, vector<8x4xf32>
    %12 = vector.shape_cast %11 : vector<8x4xf32> to vector<1x8x4xf32>
    %13 = vector.broadcast %12 : vector<1x8x4xf32> to vector<2x8x4xf32>
    %c0_10 = arith.constant 0 : index
    %c0_11 = arith.constant 0 : index
    %14 = vector.load %arg8[%c0_10, %c0_11] : memref<4x8xf32, #tpu.memory_space<vmem>>, vector<4x8xf32>
    %15 = vector.shape_cast %14 : vector<4x8xf32> to vector<1x4x8xf32>
    %16 = vector.broadcast %15 : vector<1x4x8xf32> to vector<2x4x8xf32>
    %c0_12 = arith.constant 0 : index
    %c0_13 = arith.constant 0 : index
    %17 = vector.load %arg10[%c0_12, %c0_13] : memref<4x8xf32, #tpu.memory_space<vmem>>, vector<4x8xf32>
    %18 = vector.shape_cast %17 : vector<4x8xf32> to vector<1x4x8xf32>
    %19 = vector.broadcast %18 : vector<1x4x8xf32> to vector<2x4x8xf32>
    %c0_14 = arith.constant 0 : index
    %c0_15 = arith.constant 0 : index
    %20 = vector.load %arg7[%c0_14, %c0_15] : memref<8x1xf32, #tpu.memory_space<vmem>>, vector<8x1xf32>
    %21 = vector.shape_cast %20 : vector<8x1xf32> to vector<1x8x1xf32>
    %c0_16 = arith.constant 0 : index
    %c0_17 = arith.constant 0 : index
    %22 = vector.load %arg9[%c0_16, %c0_17] : memref<4x1xf32, #tpu.memory_space<vmem>>, vector<4x1xf32>
    %23 = vector.shape_cast %22 : vector<4x1xf32> to vector<1x4x1xf32>
    %c0_18 = arith.constant 0 : index
    %c0_19 = arith.constant 0 : index
    %24 = vector.load %arg11[%c0_18, %c0_19] : memref<4x1xf32, #tpu.memory_space<vmem>>, vector<4x1xf32>
    %25 = vector.shape_cast %24 : vector<4x1xf32> to vector<1x4x1xf32>
    "tpu.trace_start"() <{level = 10 : i32, message = "ntc,nch->nth"}> : () -> ()
    %cst_20 = arith.constant dense<0.000000e+00> : vector<2x8x16xf32>
    %26 = tpu.matmul %13, %9, %cst_20 {dimension_numbers = #tpu.dot_dimension_numbers<[2], [1], [1], [2], [0, 0, 0, 1, 1, 2], [0], [0]>} : vector<2x8x4xf32>, vector<2x4x16xf32>, vector<2x8x16xf32> -> vector<2x8x16xf32>
    "tpu.trace_stop"() : () -> ()
    %27 = vector.broadcast %21 : vector<1x8x1xf32> to vector<2x8x16xf32>
    %28 = arith.addf %26, %27 : vector<2x8x16xf32>
    %cst_21 = arith.constant 3.000000e+00 : f32
    %29 = vector.broadcast %cst_21 : f32 to vector<2x8x16xf32>
    %30 = arith.addf %28, %29 : vector<2x8x16xf32>
    %cst_22 = arith.constant 0.000000e+00 : f32
    %cst_23 = arith.constant 6.000000e+00 : f32
    %31 = vector.broadcast %cst_22 : f32 to vector<2x8x16xf32>
    %32 = arith.maximumf %31, %30 : vector<2x8x16xf32>
    %33 = vector.broadcast %cst_23 : f32 to vector<2x8x16xf32>
    %34 = arith.minimumf %33, %32 : vector<2x8x16xf32>
    %cst_24 = arith.constant 0.166666672 : f32
    %35 = vector.broadcast %cst_24 : f32 to vector<2x8x16xf32>
    %36 = arith.mulf %34, %35 : vector<2x8x16xf32>
    %37 = arith.mulf %28, %36 : vector<2x8x16xf32>
    "tpu.trace_start"() <{level = 10 : i32, message = "ntc,ncw->ntw"}> : () -> ()
    %cst_25 = arith.constant dense<0.000000e+00> : vector<2x8x16xf32>
    %38 = tpu.matmul %13, %10, %cst_25 {dimension_numbers = #tpu.dot_dimension_numbers<[2], [1], [1], [2], [0, 0, 0, 1, 1, 2], [0], [0]>} : vector<2x8x4xf32>, vector<2x4x16xf32>, vector<2x8x16xf32> -> vector<2x8x16xf32>
    "tpu.trace_stop"() : () -> ()
    %39 = vector.broadcast %21 : vector<1x8x1xf32> to vector<2x8x16xf32>
    %40 = arith.addf %38, %39 : vector<2x8x16xf32>
    %cst_26 = arith.constant 3.000000e+00 : f32
    %41 = vector.broadcast %cst_26 : f32 to vector<2x8x16xf32>
    %42 = arith.addf %40, %41 : vector<2x8x16xf32>
    %cst_27 = arith.constant 0.000000e+00 : f32
    %cst_28 = arith.constant 6.000000e+00 : f32
    %43 = vector.broadcast %cst_27 : f32 to vector<2x8x16xf32>
    %44 = arith.maximumf %43, %42 : vector<2x8x16xf32>
    %45 = vector.broadcast %cst_28 : f32 to vector<2x8x16xf32>
    %46 = arith.minimumf %45, %44 : vector<2x8x16xf32>
    %cst_29 = arith.constant 0.166666672 : f32
    %47 = vector.broadcast %cst_29 : f32 to vector<2x8x16xf32>
    %48 = arith.mulf %46, %47 : vector<2x8x16xf32>
    %49 = arith.mulf %40, %48 : vector<2x8x16xf32>
    "tpu.trace_start"() <{level = 10 : i32, message = "nct,nth->nch"}> : () -> ()
    %cst_30 = arith.constant dense<0.000000e+00> : vector<2x4x16xf32>
    %50 = tpu.matmul %16, %37, %cst_30 {dimension_numbers = #tpu.dot_dimension_numbers<[2], [1], [1], [2], [0, 0, 0, 1, 1, 2], [0], [0]>} : vector<2x4x8xf32>, vector<2x8x16xf32>, vector<2x4x16xf32> -> vector<2x4x16xf32>
    "tpu.trace_stop"() : () -> ()
    %51 = vector.broadcast %23 : vector<1x4x1xf32> to vector<2x4x16xf32>
    %52 = arith.addf %50, %51 : vector<2x4x16xf32>
    %53 = arith.negf %52 : vector<2x4x16xf32>
    %54 = math.exp %53 : vector<2x4x16xf32>
    %cst_31 = arith.constant 1.000000e+00 : f32
    %55 = vector.broadcast %cst_31 : f32 to vector<2x4x16xf32>
    %56 = arith.addf %55, %54 : vector<2x4x16xf32>
    %57 = arith.divf %55, %56 : vector<2x4x16xf32>
    "tpu.trace_start"() <{level = 10 : i32, message = "nct,ntw->ncw"}> : () -> ()
    %cst_32 = arith.constant dense<0.000000e+00> : vector<2x4x16xf32>
    %58 = tpu.matmul %19, %49, %cst_32 {dimension_numbers = #tpu.dot_dimension_numbers<[2], [1], [1], [2], [0, 0, 0, 1, 1, 2], [0], [0]>} : vector<2x4x8xf32>, vector<2x8x16xf32>, vector<2x4x16xf32> -> vector<2x4x16xf32>
    "tpu.trace_stop"() : () -> ()
    %59 = vector.broadcast %25 : vector<1x4x1xf32> to vector<2x4x16xf32>
    %60 = arith.addf %58, %59 : vector<2x4x16xf32>
    %61 = arith.negf %60 : vector<2x4x16xf32>
    %62 = math.exp %61 : vector<2x4x16xf32>
    %cst_33 = arith.constant 1.000000e+00 : f32
    %63 = vector.broadcast %cst_33 : f32 to vector<2x4x16xf32>
    %64 = arith.addf %63, %62 : vector<2x4x16xf32>
    %65 = arith.divf %63, %64 : vector<2x4x16xf32>
    %66 = vector.shape_cast %57 : vector<2x4x16xf32> to vector<8x16xf32>
    %67 = vector.shape_cast %65 : vector<2x4x16xf32> to vector<8x16xf32>
    %c0_34 = arith.constant 0 : index
    %c0_35 = arith.constant 0 : index
    %68 = vector.load %arg4[%c0_34, %c0_35] : memref<16x256xf32, #tpu.memory_space<vmem>>, vector<16x256xf32>
    %cst_36 = arith.constant dense<0.000000e+00> : vector<8x256xf32>
    %69 = tpu.matmul %66, %68, %cst_36 {dimension_numbers = #tpu.dot_dimension_numbers<[1], [0], [0], [1], [0, 0, 1, 1], [], []>} : vector<8x16xf32>, vector<16x256xf32>, vector<8x256xf32> -> vector<8x256xf32>
    %c0_37 = arith.constant 0 : index
    %c0_38 = arith.constant 0 : index
    %70 = vector.load %arg5[%c0_37, %c0_38] : memref<16x256xf32, #tpu.memory_space<vmem>>, vector<16x256xf32>
    %cst_39 = arith.constant dense<0.000000e+00> : vector<8x256xf32>
    %71 = tpu.matmul %67, %70, %cst_39 {dimension_numbers = #tpu.dot_dimension_numbers<[1], [0], [0], [1], [0, 0, 1, 1], [], []>} : vector<8x16xf32>, vector<16x256xf32>, vector<8x256xf32> -> vector<8x256xf32>
    %72 = arith.mulf %69, %71 : vector<8x256xf32>
    %73 = arith.mulf %0, %72 : vector<8x256xf32>
    %c0_40 = arith.constant 0 : index
    %c0_41 = arith.constant 0 : index
    %74 = vector.load %arg12[%c0_40, %c0_41] : memref<8x256xf32, #tpu.memory_space<vmem>>, vector<8x256xf32>
    tpu.vector_store %arg12[%c0_40, %c0_41], %73 {strides = array<i32>} : memref<8x256xf32, #tpu.memory_space<vmem>>, vector<8x256xf32>,
    return
  }
  func.func @transform_0(%arg0: i32) -> (i32, i32) {
    %c0_i32 = arith.constant 0 : i32
    %c0_i32_0 = arith.constant 0 : i32
    return %arg0, %c0_i32 : i32, i32
  }
  func.func @transform_1(%arg0: i32) -> (i32, i32) {
    %c0_i32 = arith.constant 0 : i32
    %c0_i32_0 = arith.constant 0 : i32
    %c0_i32_1 = arith.constant 0 : i32
    return %c0_i32, %c0_i32_0 : i32, i32
  }
  func.func @transform_2(%arg0: i32) -> (i32, i32) {
    %c0_i32 = arith.constant 0 : i32
    %c0_i32_0 = arith.constant 0 : i32
    %c0_i32_1 = arith.constant 0 : i32
    return %c0_i32, %c0_i32_0 : i32, i32
  }
  func.func @transform_3(%arg0: i32) -> (i32, i32) {
    %c0_i32 = arith.constant 0 : i32
    %c0_i32_0 = arith.constant 0 : i32
    %c0_i32_1 = arith.constant 0 : i32
    return %c0_i32, %c0_i32_0 : i32, i32
  }
  func.func @transform_4(%arg0: i32) -> (i32, i32) {
    %c0_i32 = arith.constant 0 : i32
    %c0_i32_0 = arith.constant 0 : i32
    %c0_i32_1 = arith.constant 0 : i32
    return %c0_i32, %c0_i32_0 : i32, i32
  }
  func.func @transform_5(%arg0: i32) -> (i32, i32) {
    %c0_i32 = arith.constant 0 : i32
    %c0_i32_0 = arith.constant 0 : i32
    %c0_i32_1 = arith.constant 0 : i32
    return %c0_i32, %c0_i32_0 : i32, i32
  }
  func.func @transform_6(%arg0: i32) -> (i32, i32) {
    %c0_i32 = arith.constant 0 : i32
    %c0_i32_0 = arith.constant 0 : i32
    %c0_i32_1 = arith.constant 0 : i32
    return %c0_i32, %c0_i32_0 : i32, i32
  }
  func.func @transform_7(%arg0: i32) -> (i32, i32) {
    %c0_i32 = arith.constant 0 : i32
    %c0_i32_0 = arith.constant 0 : i32
    %c0_i32_1 = arith.constant 0 : i32
    return %c0_i32, %c0_i32_0 : i32, i32
  }
  func.func @transform_8(%arg0: i32) -> (i32, i32) {
    %c0_i32 = arith.constant 0 : i32
    %c0_i32_0 = arith.constant 0 : i32
    %c0_i32_1 = arith.constant 0 : i32
    return %c0_i32, %c0_i32_0 : i32, i32
  }
  func.func @transform_9(%arg0: i32) -> (i32, i32) {
    %c0_i32 = arith.constant 0 : i32
    %c0_i32_0 = arith.constant 0 : i32
    %c0_i32_1 = arith.constant 0 : i32
    return %c0_i32, %c0_i32_0 : i32, i32
  }
  func.func @transform_10(%arg0: i32) -> (i32, i32) {
    %c0_i32 = arith.constant 0 : i32
    %c0_i32_0 = arith.constant 0 : i32
    %c0_i32_1 = arith.constant 0 : i32
    return %c0_i32, %c0_i32_0 : i32, i32
  }
  func.func @transform_11(%arg0: i32) -> (i32, i32) {
    %c0_i32 = arith.constant 0 : i32
    %c0_i32_0 = arith.constant 0 : i32
    return %arg0, %c0_i32 : i32, i32
  }
}

</mosaic_0001>

<bundles_post_ra>
// kernel: tpu_custom_call.1
= control target key start
LH: loop header
LB: loop body
LE: loop exit
PB: predicated region body
PF: predicated region fallthrough
CT: control target
= control target key end

     0   :  { %s1703_s0 = inlined_call_operand.vmem [shape: f32[8,256], index: 0, kind: input, shape index: {}]   ;;  %s1704_s1 = inlined_call_operand.vmem [shape: f32[256,16], index: 1, kind: input, shape index: {}]   ;;  %s1705_s2 = inlined_call_operand.vmem [shape: f32[256,16], index: 2, kind: input, shape index: {}]   ;;  %s1706_s3 = inlined_call_operand.vmem [shape: f32[16,256], index: 3, kind: input, shape index: {}]   ;;  %s1707_s4 = inlined_call_operand.vmem [shape: f32[16,256], index: 4, kind: input, shape index: {}]   ;;  %s1708_s5 = inlined_call_operand.vmem [shape: f32[8,4], index: 5, kind: input, shape index: {}]   ;;  %s1709_s6 = inlined_call_operand.vmem [shape: f32[8,1], index: 6, kind: input, shape index: {}]   ;;  %s1710_s7 = inlined_call_operand.vmem [shape: f32[4,8], index: 7, kind: input, shape index: {}]   ;;  %s1711_s8 = inlined_call_operand.vmem [shape: f32[4,1], index: 8, kind: input, shape index: {}]   ;;  %s1712_s9 = inlined_call_operand.vmem [shape: f32[4,8], index: 9, kind: input, shape index: {}]   ;;  %s1713_s10 = inlined_call_operand.vmem [shape: f32[4,1], index: 10, kind: input, shape index: {}]   ;;  %s1714_s11 = inlined_call_operand.hbm [shape: f32[8,256], index: 11, kind: output, shape index: {}]  }
   0x1   :  { %v57_v0 = vld [vmem:[%s1704_s1 + $0x80] sm:$0xff]  ;;  %v58_v1 = vld [vmem:[%s1704_s1 + $0x88] sm:$0xff]  ;;  %v59_v9 = vld [vmem:[%s1704_s1 + $0x90] sm:$0xff] }
   0x2   :  { %v41_v2 = vld [vmem:[%s1704_s1] sm:$0xff]  ;;  %v1221_v3 = vpack.c.bf16 %v58_v1, %v57_v0  ;;  %v42_v4 = vld [vmem:[%s1704_s1 + $0x8] sm:$0xff]  ;;  %v60_v10 = vld [vmem:[%s1704_s1 + $0x98] sm:$0xff] }
   0x3   :  { %v160_v5 = vld [vmem:[%s1705_s2 + $0x80] sm:$0xff]  ;;  %v161_v6 = vld [vmem:[%s1705_s2 + $0x88] sm:$0xff]  ;;  %v1223_v7 = vpack.c.bf16 %v42_v4, %v41_v2  ;;  %v1225_v12 = vpack.c.bf16 %v60_v10, %v59_v9  ;;  %v43_v14 = vld [vmem:[%s1704_s1 + $0x10] sm:$0xff] }
   0x4   :  { %v1253_v8 = vpack.c.bf16 %v161_v6, %v160_v5  ;;  %v144_v11 = vld [vmem:[%s1705_s2] sm:$0xff]  ;;  %1222 = vmatprep.subr.bf16.mxu0 %v1221_v3  ;;  %v145_v13 = vld [vmem:[%s1705_s2 + $0x8] sm:$0xff]  ;;  %v44_v15 = vld [vmem:[%s1704_s1 + $0x18] sm:$0xff] }
   0x5   :  { %1224 = vmatpush3.bf16.msra.mxu0 %v1223_v7  ;;  %v1255_v16 = vpack.c.bf16 %v145_v13, %v144_v11  ;;  %v1227_v17 = vpack.c.bf16 %v44_v15, %v43_v14  ;;  %v162_v18 = vld [vmem:[%s1705_s2 + $0x90] sm:$0xff]  ;;  %v163_v19 = vld [vmem:[%s1705_s2 + $0x98] sm:$0xff]  ;;  %v61_v20 = vld [vmem:[%s1704_s1 + $0xa0] sm:$0xff] }
   0x6   :  { %1254 = vmatprep.subr.bf16.mxu1 %v1253_v8  ;;  %1226 = vmatprep.subr.bf16.mxu0 %v1225_v12  ;;  %v1257_v21 = vpack.c.bf16 %v163_v19, %v162_v18  ;;  %v62_v22 = vld [vmem:[%s1704_s1 + $0xa8] sm:$0xff]  ;;  %v146_v23 = vld [vmem:[%s1705_s2 + $0x10] sm:$0xff]  ;;  %v147_v24 = vld [vmem:[%s1705_s2 + $0x18] sm:$0xff] }
   0x7   :  { %1256 = vmatpush3.bf16.msra.mxu1 %v1255_v16  ;;  %v1229_v25 = vpack.c.bf16 %v62_v22, %v61_v20  ;;  %v1259_v26 = vpack.c.bf16 %v147_v24, %v146_v23  ;;  %v45_v27 = vld [vmem:[%s1704_s1 + $0x20] sm:$0xff]  ;;  %v46_v28 = vld [vmem:[%s1704_s1 + $0x28] sm:$0xff]  ;;  %v63_v31 = vld [vmem:[%s1704_s1 + $0xb0] sm:$0xff] }
   0x8   :  { %v164_v29 = vld [vmem:[%s1705_s2 + $0xa0] sm:$0xff]  ;;  %1258 = vmatprep.subr.bf16.mxu1 %v1257_v21  ;;  %v165_v30 = vld [vmem:[%s1705_s2 + $0xa8] sm:$0xff]  ;;  %v64_v32 = vld [vmem:[%s1704_s1 + $0xb8] sm:$0xff]  ;;  %v1231_v33 = vpack.c.bf16 %v46_v28, %v45_v27 }
   0x9   :  { %1228 = vmatpush3.bf16.msra.mxu0 %v1227_v17  ;;  %v1261_v34 = vpack.c.bf16 %v165_v30, %v164_v29  ;;  %v148_v35 = vld [vmem:[%s1705_s2 + $0x20] sm:$0xff]  ;;  %v149_v36 = vld [vmem:[%s1705_s2 + $0x28] sm:$0xff]  ;;  %v47_v37 = vld [vmem:[%s1704_s1 + $0x30] sm:$0xff]  ;;  %v1233_v38 = vpack.c.bf16 %v64_v32, %v63_v31 }
   0xa   :  { %1230 = vmatprep.subr.bf16.mxu0 %v1229_v25  ;;  %v48_v39 = vld [vmem:[%s1704_s1 + $0x38] sm:$0xff]  ;;  %v166_v40 = vld [vmem:[%s1705_s2 + $0xb0] sm:$0xff]  ;;  %v1263_v42 = vpack.c.bf16 %v149_v36, %v148_v35  ;;  %v65_v43 = vld [vmem:[%s1704_s1 + $0xc0] sm:$0xff] }
   0xb   :  { %v167_v41 = vld [vmem:[%s1705_s2 + $0xb8] sm:$0xff]  ;;  %1260 = vmatpush3.bf16.msra.mxu1 %v1259_v26  ;;  %v66_v44 = vld [vmem:[%s1704_s1 + $0xc8] sm:$0xff]  ;;  %v150_v46 = vld [vmem:[%s1705_s2 + $0x30] sm:$0xff]  ;;  %v1235_v48 = vpack.c.bf16 %v48_v39, %v47_v37 }
   0xc   :  { %1262 = vmatprep.subr.bf16.mxu1 %v1261_v34  ;;  %v1265_v45 = vpack.c.bf16 %v167_v41, %v166_v40  ;;  %v151_v47 = vld [vmem:[%s1705_s2 + $0x38] sm:$0xff]  ;;  %v168_v49 = vld [vmem:[%s1705_s2 + $0xc0] sm:$0xff]  ;;  %v169_v50 = vld [vmem:[%s1705_s2 + $0xc8] sm:$0xff]  ;;  %v1237_v51 = vpack.c.bf16 %v66_v44, %v65_v43 }
   0xd   :  { %1232 = vmatpush3.bf16.msra.mxu0 %v1231_v33  ;;  %v49_v52 = vld [vmem:[%s1704_s1 + $0x40] sm:$0xff]  ;;  %v50_v53 = vld [vmem:[%s1704_s1 + $0x48] sm:$0xff]  ;;  %v1267_v54 = vpack.c.bf16 %v151_v47, %v150_v46  ;;  %v67_v55 = vld [vmem:[%s1704_s1 + $0xd0] sm:$0xff]  ;;  %v1269_v57 = vpack.c.bf16 %v169_v50, %v168_v49 }
   0xe   :  { %1234 = vmatprep.subr.bf16.mxu0 %v1233_v38  ;;  %v68_v56 = vld [vmem:[%s1704_s1 + $0xd8] sm:$0xff]  ;;  %v152_v58 = vld [vmem:[%s1705_s2 + $0x40] sm:$0xff]  ;;  %v153_v59 = vld [vmem:[%s1705_s2 + $0x48] sm:$0xff]  ;;  %v1239_v60 = vpack.c.bf16 %v50_v53, %v49_v52 }
   0xf   :  { %1264 = vmatpush3.bf16.msra.mxu1 %v1263_v42  ;;  %v170_v61 = vld [vmem:[%s1705_s2 + $0xd0] sm:$0xff]  ;;  %v171_v62 = vld [vmem:[%s1705_s2 + $0xd8] sm:$0xff]  ;;  %v1241_v63 = vpack.c.bf16 %v68_v56, %v67_v55  ;;  %v1271_v2 = vpack.c.bf16 %v153_v59, %v152_v58  ;;  %v69_v3 = vld [vmem:[%s1704_s1 + $0xe0] sm:$0xff] }
  0x10   :  { %1266 = vmatprep.subr.bf16.mxu1 %v1265_v45  ;;  %v51_v0 = vld [vmem:[%s1704_s1 + $0x50] sm:$0xff]  ;;  %v52_v1 = vld [vmem:[%s1704_s1 + $0x58] sm:$0xff]  ;;  %v70_v4 = vld [vmem:[%s1704_s1 + $0xe8] sm:$0xff]  ;;  %v1273_v5 = vpack.c.bf16 %v171_v62, %v170_v61 }
  0x11   :  { %1236 = vmatpush3.bf16.msra.mxu0 %v1235_v48  ;;  %v154_v6 = vld [vmem:[%s1705_s2 + $0x50] sm:$0xff]  ;;  %v155_v7 = vld [vmem:[%s1705_s2 + $0x58] sm:$0xff]  ;;  %v1243_v8 = vpack.c.bf16 %v52_v1, %v51_v0  ;;  %v172_v9 = vld [vmem:[%s1705_s2 + $0xe0] sm:$0xff]  ;;  %v1245_v12 = vpack.c.bf16 %v70_v4, %v69_v3 }
  0x12   :  { %1238 = vmatprep.subr.bf16.mxu0 %v1237_v51  ;;  %v173_v10 = vld [vmem:[%s1705_s2 + $0xe8] sm:$0xff]  ;;  %v53_v13 = vld [vmem:[%s1704_s1 + $0x60] sm:$0xff]  ;;  %v1275_v15 = vpack.c.bf16 %v155_v7, %v154_v6  ;;  %v71_v16 = vld [vmem:[%s1704_s1 + $0xf0] sm:$0xff] }
  0x13   :  { %1268 = vmatpush3.bf16.msra.mxu1 %v1267_v54  ;;  %v1562_v11 = vld [vmem:[%s1703_s0 + $0x8] sm:$0xff]  ;;  %v72_v17 = vld [vmem:[%s1704_s1 + $0xf8] sm:$0xff] }
  0x14   :  { %1270 = vmatprep.subr.bf16.mxu1 %v1269_v57  ;;  %v54_v14 = vld [vmem:[%s1704_s1 + $0x68] sm:$0xff]  ;;  %137 = vmatprep.mubr.f32.mxu0 %v1562_v11 }
  0x15   :  { %1240 = vmatpush3.bf16.msra.mxu0 %v1239_v60  ;;  %240 = vmatprep.mubr.f32.mxu1 %v1562_v11 }
  0x16   :  { %1242 = vmatprep.subr.bf16.mxu0 %v1241_v63 }
  0x17   :  { %1272 = vmatpush3.bf16.msra.mxu1 %v1271_v2 }
  0x18   :  { %16 = vsyncpa [#allocation3], 0  ;;  %1274 = vmatprep.subr.bf16.mxu1 %v1273_v5  ;;  %v1277_v18 = vpack.c.bf16 %v173_v10, %v172_v9  ;;  %v156_v19 = vld [vmem:[%s1705_s2 + $0x60] sm:$0xff]  ;;  %v157_v20 = vld [vmem:[%s1705_s2 + $0x68] sm:$0xff]  ;;  %v1247_v21 = vpack.c.bf16 %v54_v14, %v53_v13  ;;  %v1249_v24 = vpack.c.bf16 %v72_v17, %v71_v16  ;;  %v1339_v34 = vmov 0.0  }
  0x19   :  { %1244 = vmatpush3.bf16.msra.mxu0 %v1243_v8  ;;  %v174_v22 = vld [vmem:[%s1705_s2 + $0xf0] sm:$0xff]  ;;  %v175_v23 = vld [vmem:[%s1705_s2 + $0xf8] sm:$0xff]  ;;  %v1279_v27 = vpack.c.bf16 %v157_v20, %v156_v19  ;;  %v1605_v33 = vld [vmem:[%s1703_s0] sm:$0xff]  ;;  %vm1340_vm0 = vmmov 0   ;;  %v1341_v36 = vmov 0   ;;  %vm266_vm1 = vcmask 1043456  }
  0x1a   :  { %1246 = vmatprep.subr.bf16.mxu0 %v1245_v12  ;;  %v55_v25 = vld [vmem:[%s1704_s1 + $0x70] sm:$0xff]  ;;  %v56_v26 = vld [vmem:[%s1704_s1 + $0x78] sm:$0xff]  ;;  %v1281_v28 = vpack.c.bf16 %v175_v23, %v174_v22  ;;  %v254_v35 = vld [vmem:[%s1709_s6] sm:$0xff]  ;;  %1297 = vset.pattern.permute.xlu0 %v1341_v36  ;;  %vm262_vm2 = vcmask 31744   ;;  %vm580_vm3 = vcmask 64512   ;;  %vm903_vm4 = vcmask 130048  }
  0x1b   :  { %1276 = vmatpush3.bf16.msra.mxu1 %v1275_v15  ;;  %v158_v29 = vld [vmem:[%s1705_s2 + $0x70] sm:$0xff]  ;;  %v159_v30 = vld [vmem:[%s1705_s2 + $0x78] sm:$0xff]  ;;  %v1251_v31 = vpack.c.bf16 %v56_v26, %v55_v25  ;;  %1298 = vset.pattern.permute.xlu1 %v1341_v36  ;;  %v255_v37 = vld [vmem:[%s1711_s8] sm:$0xf] }
  0x1c   :  { %1278 = vmatprep.subr.bf16.mxu1 %v1277_v18  ;;  %v1283_v32 = vpack.c.bf16 %v159_v30, %v158_v29  ;;  %259 = vperm.xlu0 %1297, %v254_v35   ;;  %v251_v45 = vld [vmem:[%s1708_s5] sm:$0xff]  ;;  %v897_v22 = vld [vmem:[%s1706_s3 + $0x8] sm:$0xff]  ;;  %v899_v23 = vld [vmem:[%s1706_s3 + $0x18] sm:$0xff] }
  0x1d   :  { %1248 = vmatpush3.bf16.msra.mxu0 %v1247_v21  ;;  %v256_v49 = vld [vmem:[%s1713_s10] sm:$0xf]  ;;  %v1285_v25 = vpack.c.bf16 %v899_v23, %v897_v22  ;;  %v898_v26 = vld [vmem:[%s1706_s3 + $0x10] sm:$0xff]  ;;  %v980_v29 = vld [vmem:[%s1707_s4 + $0x18] sm:$0xff] }
  0x1e   :  { %1250 = vmatprep.subr.bf16.mxu0 %v1249_v24  ;;  %738 = vperm.xlu1 %1298, %v256_v49   ;;  %v252_v14 = vld [vmem:[%s1710_s7] sm:$0xf] }
  0x1f   :  { %1280 = vmatpush3.bf16.msra.mxu1 %v1279_v27  ;;  %v253_v20 = vld [vmem:[%s1712_s9] sm:$0xf] }
  0x20   :  { %1282 = vmatprep.subr.bf16.mxu1 %v1281_v28  ;;  %577 = vperm.xlu0 %1297, %v255_v37   ;;  %v896_v24 = vld [vmem:[%s1706_s3] sm:$0xff]  ;;  %v978_v28 = vld [vmem:[%s1707_s4 + $0x8] sm:$0xff]  ;;  %s1342_s3 = smov [#allocation2]  }
  0x21   :  { %1252 = vmatpush3.bf16.msra.mxu0 %v1251_v31  ;;  %v1287_v27 = vpack.c.bf16 %v898_v26, %v896_v24  ;;  %v1289_v30 = vpack.c.bf16 %v980_v29, %v978_v28  ;;  %v977_v31 = vld [vmem:[%s1707_s4] sm:$0xff] }
  0x22   :  { %1181 = vmatprep.subr.mxu0 %v1339_v34 }
  0x23   :  { %1284 = vmatpush3.bf16.msra.mxu1 %v1283_v32  ;;  %v979_v32 = vld [vmem:[%s1707_s4 + $0x10] sm:$0xff]  ;;  %s1069_s4 = sshll.u32 %s1342_s3, 4  ;;  %s1070_s4 = int_to_ptr.vmem [resolvable:$true] %s1069_s4 }
  0x24   :  { %138 = vmatmul.mubr.f32.vlgmr.msra.gmra.mrb[0].mxu0 %v1605_v33  ;;  %1186 = vmatprep.subr.mxu1 %v1339_v34  ;;  %s1315_s2 = scalar_lea.vmem %s1070_s4, 256  ;;  %p1320_p1 = scmp.lt.s32.totalorder %s1070_s4, %s1070_s4 }
  0x25   :  { %1183 = vmatprep.mubr.msk.f32.mxu0 %vm1340_vm0, %v1339_v34  ;;  %p1316_p0 = scmp.ne.s32.totalorder %s1070_s4, %s1315_s2  ;;  %p1321_p2 = scmp.lt.s32.totalorder %s1315_s2, %s1315_s2 }
  0x26   :  { %241 = vmatmul.mubr.f32.vlgmr.msra.gmra.mrb[0].mxu1 %v1605_v33 }
  0x27   :  { %1188 = vmatprep.mubr.msk.f32.mxu1 %vm1340_vm0, %v1339_v34  ;;  %p1322_p3 = por %p1321_p2, %p1320_p1 }
  0x29   :  { %p1323_p4 = pnand %p1322_p3, %p1316_p0 }
  0x9b   :  { %v260_v50 = vpop.permute.xlu0 %259 }
  0x9f   :  { %v578_v35 = vpop.permute.xlu0 %577 }
  0xf7   :  { %v1127_v38 = vpop.f32.mrb[0].mxu0 }
  0xf8   :  { %v1128_v39 = vpop.f32.mrb[1].mxu0 }
  0xf9   :  { %v1129_v40 = vadd.f32 %v1128_v39, %v1127_v38  ;;  %v1162_v41 = vpop.f32.mrb[0].mxu1 }
  0xfa   :  { %v1163_v42 = vpop.f32.mrb[1].mxu1 }
  0xfb   :  { %v143_v43 = vmul.f32 0.0625, %v1129_v40  ;;  %v1164_v44 = vadd.f32 %v1163_v42, %v1162_v41  ;;  %v739_v40 = vpop.permute.xlu1 %738 }
  0xfd   :  { %v248_v46 = vcombine.high %v143_v43, %v143_v43  ;;  %v246_v47 = vmul.f32 0.0625, %v1164_v44  ;;  %1182 = vmatpush3.msk.msra.mxu0 %vm266_vm1, %v143_v43 }
  0xfe   :  { %1184 = vmatmul.mubr.msk.f32.vlgmr.msra.gmra.mrb[2].mxu0 %vm262_vm2, %v251_v45  ;;  %1191 = vmatprep.subr.mxu0 %v1339_v34 }
  0xff   :  { %v250_v48 = vcombine.high %v246_v47, %v246_v47  ;;  %1187 = vmatpush3.msk.msra.mxu1 %vm266_vm1, %v248_v46  ;;  %1192 = vmatpush3.msk.msra.mxu0 %vm266_vm1, %v246_v47 }
 0x100   :  { %1189 = vmatmul.mubr.msk.f32.vlgmr.msra.gmra.mrb[2].mxu1 %vm262_vm2, %v251_v45  ;;  %1193 = vmatprep.mubr.msk.f32.mxu0 %vm1340_vm0, %v1339_v34 }
 0x101   :  { %1196 = vmatprep.subr.mxu1 %v1339_v34  ;;  %1198 = vmatprep.mubr.msk.f32.mxu1 %vm1340_vm0, %v1339_v34 }
 0x102   :  { %1194 = vmatmul.mubr.msk.f32.vlgmr.msra.gmra.mrb[4].mxu0 %vm262_vm2, %v251_v45  ;;  %1197 = vmatpush3.msk.msra.mxu1 %vm266_vm1, %v250_v48 }
 0x103   :  { %1201 = vmatprep.subr.mxu0 %v1339_v34  ;;  %1203 = vmatprep.mubr.msk.f32.mxu0 %vm1340_vm0, %v1339_v34 }
 0x104   :  { %1199 = vmatmul.mubr.msk.f32.vlgmr.msra.gmra.mrb[4].mxu1 %vm262_vm2, %v251_v45  ;;  %1206 = vmatprep.subr.mxu1 %v1339_v34 }
 0x105   :  { %1208 = vmatprep.mubr.msk.f32.mxu1 %vm1340_vm0, %v1339_v34 }
 0x1d1   :  { %v335_v51 = vpop.f32.mrb[2].mxu0 }
 0x1d2   :  { %v336_v52 = vadd.f32 %v335_v51, %v260_v50  ;;  %v1185_v53 = vpop.f32.mrb[3].mxu0 }
 0x1d3   :  { %v407_v54 = vpop.f32.mrb[2].mxu1 }
 0x1d4   :  { %v411_v55 = vadd.f32 3.0, %v336_v52  ;;  %v408_v56 = vadd.f32 %v407_v54, %v260_v50  ;;  %v1190_v57 = vpop.f32.mrb[3].mxu1 }
 0x1d5   :  { %v489_v58 = vpop.f32.mrb[4].mxu0 }
 0x1d6   :  { %v413_v59 = vmax.f32 %v411_v55, 0.0  ;;  %v412_v60 = vadd.f32 3.0, %v408_v56  ;;  %v490_v61 = vadd.f32 %v489_v58, %v260_v50  ;;  %v1195_v62 = vpop.f32.mrb[5].mxu0 }
 0x1d7   :  { %v561_v63 = vpop.f32.mrb[4].mxu1 }
 0x1d8   :  { %v415_v0 = vmin.f32 %v413_v59, 6.0  ;;  %v414_v1 = vmax.f32 %v412_v60, 0.0  ;;  %v565_v2 = vadd.f32 3.0, %v490_v61  ;;  %v562_v3 = vadd.f32 %v561_v63, %v260_v50  ;;  %v1200_v4 = vpop.f32.mrb[5].mxu1 }
 0x1da   :  { %v417_v5 = vmul.f32 0.16666667, %v415_v0  ;;  %v416_v6 = vmin.f32 %v414_v1, 6.0  ;;  %v567_v7 = vmax.f32 %v565_v2, 0.0  ;;  %v566_v8 = vadd.f32 3.0, %v562_v3 }
 0x1dc   :  { %v419_v9 = vmul.f32 %v417_v5, %v336_v52  ;;  %v418_v10 = vmul.f32 0.16666667, %v416_v6  ;;  %v569_v12 = vmin.f32 %v567_v7, 6.0  ;;  %v568_v13 = vmax.f32 %v566_v8, 0.0 }
 0x1de   :  { %v420_v15 = vmul.f32 %v418_v10, %v408_v56  ;;  %v571_v16 = vmul.f32 0.16666667, %v569_v12  ;;  %v570_v17 = vmin.f32 %v568_v13, 6.0  ;;  %1202 = vmatpush3.msra.mxu0 %v419_v9 }
 0x1df   :  { %1204 = vmatmul.mubr.msk.f32.vlgmr.msra.gmra.mrb[6].mxu0 %vm580_vm3, %v252_v14  ;;  %1211 = vmatprep.subr.mxu0 %v1339_v34 }
 0x1e0   :  { %v573_v18 = vmul.f32 %v571_v16, %v490_v61  ;;  %v572_v19 = vmul.f32 0.16666667, %v570_v17  ;;  %1207 = vmatpush3.msra.mxu1 %v420_v15  ;;  %1213 = vmatprep.mubr.msk.f32.mxu0 %vm1340_vm0, %v1339_v34 }
 0x1e1   :  { %1209 = vmatmul.mubr.msk.f32.vlgmr.msra.gmra.mrb[6].mxu1 %vm580_vm3, %v252_v14  ;;  %1216 = vmatprep.subr.mxu1 %v1339_v34 }
 0x1e2   :  { %v574_v21 = vmul.f32 %v572_v19, %v562_v3  ;;  %1212 = vmatpush3.msra.mxu0 %v573_v18  ;;  %1218 = vmatprep.mubr.msk.f32.mxu1 %vm1340_vm0, %v1339_v34 }
 0x1e3   :  { %1214 = vmatmul.mubr.msk.f32.vlgmr.msra.gmra.mrb[8].mxu0 %vm580_vm3, %v253_v20  ;;  %1286 = vmatprep.subr.bf16.mxu0 %v1285_v25 }
 0x1e4   :  { %1217 = vmatpush3.msra.mxu1 %v574_v21  ;;  %970 = vmatprep.mubr.f32.mxu0 %v1339_v34 }
 0x1e5   :  { %1219 = vmatmul.mubr.msk.f32.vlgmr.msra.gmra.mrb[8].mxu1 %vm580_vm3, %v253_v20  ;;  %1288 = vmatpush1.bf16.msra.mxu0 %v1287_v27 }
 0x1e6   :  { %1050 = vmatprep.mubr.f32.mxu1 %v1339_v34  ;;  %v1291_v34 = vpack.c.bf16 %v979_v32, %v977_v31  ;;  %1290 = vmatprep.subr.bf16.mxu1 %v1289_v30 }
 0x1e8   :  { %1292 = vmatpush1.bf16.msra.mxu1 %v1291_v34 }
 0x2b2   :  { %v650_v36 = vpop.f32.mrb[6].mxu0 }
 0x2b3   :  { %v651_v37 = vadd.f32 %v650_v36, %v578_v35  ;;  %v1205_v38 = vpop.f32.mrb[7].mxu0 }
 0x2b4   :  { %v720_v39 = vpop.f32.mrb[6].mxu1 }
 0x2b5   :  { %v1087_v41 = vmul.f32 -1.442695, %v651_v37  ;;  %v721_v42 = vadd.f32 %v720_v39, %v578_v35  ;;  %v1210_v43 = vpop.f32.mrb[7].mxu1 }
 0x2b6   :  { %v810_v44 = vpop.f32.mrb[8].mxu0 }
 0x2b7   :  { %1299 = vpow2.f32 %v1087_v41  ;;  %v1088_v45 = vmul.f32 -1.442695, %v721_v42  ;;  %v811_v46 = vadd.f32 %v810_v44, %v739_v40  ;;  %v1215_v47 = vpop.f32.mrb[9].mxu0 }
 0x2b8   :  { %v880_v48 = vpop.f32.mrb[8].mxu1 }
 0x2b9   :  { %1301 = vpow2.f32 %v1088_v45  ;;  %v1091_v49 = vmul.f32 -1.442695, %v811_v46  ;;  %v881_v50 = vadd.f32 %v880_v48, %v739_v40  ;;  %v1220_v51 = vpop.f32.mrb[9].mxu1 }
 0x2bb   :  { %1303 = vpow2.f32 %v1091_v49  ;;  %v1092_v52 = vmul.f32 -1.442695, %v881_v50 }
 0x2bd   :  { %1305 = vpow2.f32 %v1092_v52 }
 0x2c1   :  { %v1300_v53 = vpop.eup %1299 }
 0x2c2   :  { %v730_v54 = vadd.f32 1.0, %v1300_v53 }
 0x2c3   :  { %v1302_v55 = vpop.eup %1301 }
 0x2c4   :  { %v731_v56 = vadd.f32 1.0, %v1302_v55  ;;  %1307 = vrcp.f32 %v730_v54 }
 0x2c5   :  { %v1304_v57 = vpop.eup %1303 }
 0x2c6   :  { %1309 = vrcp.f32 %v731_v56  ;;  %v890_v58 = vadd.f32 1.0, %v1304_v57 }
 0x2c7   :  { %v1306_v59 = vpop.eup %1305 }
 0x2c8   :  { %1311 = vrcp.f32 %v890_v58  ;;  %v891_v60 = vadd.f32 1.0, %v1306_v59 }
 0x2ca   :  { %1313 = vrcp.f32 %v891_v60 }
 0x2ce   :  { %v1308_v61 = vpop.eup %1307 }
 0x2d0   :  { %v1310_v62 = vpop.eup %1309 }
 0x2d1   :  { %v902_v63 = vcombine.low %v1308_v61, %v1310_v62 }
 0x2d2   :  { %v1312_v0 = vpop.eup %1311 }
 0x2d3   :  { %1093 = vmatmul.mubr.msk.f32.vlgmr.msra.gmra.mrb[10].mxu0 %vm903_vm4, %v902_v63 }
 0x2d4   :  { %v1314_v1 = vpop.eup %1313 }
 0x2d5   :  { %v983_v2 = vcombine.low %v1312_v0, %v1314_v1 }
 0x2d7   :  { %1094 = vmatmul.mubr.msk.f32.vlgmr.msra.gmra.mrb[10].mxu1 %vm903_vm4, %v983_v2 }
 0x3a6   :  { %v972_v3 = vpop.f32.mrb[10].mxu0 }
 0x3a7   :  { %v974_v4 = vpop.f32.mrb[11].mxu0 }
 0x3aa   :  { %v1052_v5 = vpop.f32.mrb[10].mxu1 }
 0x3ab   :  { %v1057_v6 = vmul.f32 %v1052_v5, %v972_v3  ;;  %v1054_v7 = vpop.f32.mrb[11].mxu1 }
 0x3ac   :  { %v1058_v8 = vmul.f32 %v1054_v7, %v974_v4 }
 0x3ad   :  { %v1059_v9 = vmul.f32 %v1057_v6, %v1605_v33 }
 0x3ae   :  { %v1060_v10 = vmul.f32 %v1058_v8, %v1562_v11 }
 0x3af   :  { %1061 = vst [vmem:[#allocation2] sm:$0xff] %v1059_v9 }
 0x3b0   :  { %1062 = vst [vmem:[#allocation2 + $0x8] sm:$0xff] %v1060_v10 }
 0x3b1   :  { %1326 = shalt.err (!%p1323_p4)
}
 0x3b2   :  { %s1327_s16 = scalar_lea.hbm %s1714_s11, 256 }
 0x3b3   :  { %p1328_p5 = scmp.ne.s32.totalorder %s1714_s11, %s1327_s16  ;;  %p1331_p6 = scmp.lt.u32.totalorder %s1327_s16, %s1714_s11 }
 0x3b5   :  { %p1333_p7 = pnand %p1331_p6, %p1328_p5 }
 0x3b7   :  { %1336 = shalt.err (!%p1333_p7)
}
 0x3b8   :  { %1072 = dma.vmem_to_hbm [thread:$0]  %s1070_s4, 256, %s1714_s11, [#allocation3]  }
 0x3b9   :  { %1337 = dma.done.wait [#allocation3], 256  }
 0x3ba   :  { %1338 = vsyncadd [#allocation3], 4294967040 }
 0x3bb   :  { %1076 = vsyncpa [#allocation3], 1 }

</bundles_post_ra>
